<compile_context>
chip_gen: v7x
topology: tpu7x:2x2x1
jax: 0.10.0
libtpu: 0.0.40
codegen_flags: <defaults>
</compile_context>

<pallas_src>
import jax
import jax.numpy as jnp
from jax.experimental import pallas as pl
from jax.experimental.pallas import tpu as pltpu

LN_EPS = 1e-5


def _patch2feature_kernel(x_ref, w_ref, b_ref, g_ref, bb_ref, alpha_ref, out_ref):
    # x_ref:     (Bt, C*E)       activation rows (one row per batch element)
    # w_ref:     (C*E, K*P2)     fused Linear + 1x1-conv weight
    # b_ref:     (1, K*P2)       fused bias
    # g_ref:     (1, K*P2)       LayerNorm gamma (flattened over K,H,W)
    # bb_ref:    (1, K*P2)       LayerNorm beta
    # alpha_ref: (1,)  [SMEM]    PReLU scalar parameter
    # out_ref:   (Bt, K*P2)      lane-dense output slab
    y = jnp.dot(x_ref[...], w_ref[...],
                preferred_element_type=jnp.float32) + b_ref[...]      # (Bt, KP2)

    # LayerNorm over the full (K, P, P) extent per batch row == axis -1 here.
    # One pass: sum and sum-of-squares from the same live value.
    n = y.shape[-1]
    inv_n = 1.0 / n
    s = jnp.sum(y, axis=-1, keepdims=True)
    ss = jnp.sum(y * y, axis=-1, keepdims=True)
    mean = s * inv_n
    var = jnp.maximum(ss * inv_n - mean * mean, 0.0)
    inv = jax.lax.rsqrt(var + LN_EPS)
    normed = (y - mean) * inv * g_ref[...] + bb_ref[...]

    # PReLU with a single scalar parameter (read from SMEM).
    alpha = alpha_ref[0]
    out_ref[...] = jnp.where(normed > 0, normed, alpha * normed).astype(out_ref.dtype)


def patch2feature(patch, params, patch_size, *, block_b=128):
    """patch: (B, C, E) float32. Returns (B, K, P, P) float32 (NCHW)."""
    B, C, E = patch.shape
    P2 = patch_size * patch_size
    K = params["w_conv"].shape[0]
    KP2 = K * P2
    CE = C * E

    # ---- Fold parameters: Linear followed by a 1x1 conv is a single linear map.
    #   feature[b,k,hw] = sum_{c,e} x[b,c,e] * Wc[k,c] * Wp[hw,e]
    #                     + (sum_c Wc[k,c]) * bp[hw] + bc[k]
    wp = params["w_proj"]                              # (P2, E)
    wc = params["w_conv"].reshape(K, C)                # (K, C)
    w_fused = jnp.einsum("kc,pe->cekp", wc, wp).reshape(CE, KP2)          # (CE, KP2)
    b_fused = (wc.sum(axis=1)[:, None] * params["b_proj"][None, :]
               + params["b_conv"][:, None]).reshape(1, KP2)               # (1, KP2)
    gamma = params["ln_gamma"].reshape(1, KP2)
    beta = params["ln_beta"].reshape(1, KP2)
    alpha = params["prelu"].reshape(1).astype(jnp.float32)                # SMEM scalar

    # ---- Batch tiling: whole batch in one grid step when small; otherwise
    #      8-aligned tiles of block_b rows (pad + slice).
    x2d = patch.reshape(B, CE)
    if B <= block_b:
        bt, Bp = B, B                          # block == full dim, no padding
    else:
        bt = block_b                           # multiple of 8
        Bp = pl.cdiv(B, bt) * bt
        if Bp != B:
            x2d = jnp.pad(x2d, ((0, Bp - B), (0, 0)))
    grid = (Bp // bt,)

    out_flat = pl.pallas_call(
        _patch2feature_kernel,
        out_shape=jax.ShapeDtypeStruct((Bp, KP2), jnp.float32),
        grid_spec=pltpu.PrefetchScalarGridSpec(
            num_scalar_prefetch=0,
            grid=grid,
            in_specs=[
                pl.BlockSpec((bt, CE), lambda i: (i, 0)),      # activations
                pl.BlockSpec((CE, KP2), lambda i: (0, 0)),     # fused weight
                pl.BlockSpec((1, KP2), lambda i: (0, 0)),      # fused bias
                pl.BlockSpec((1, KP2), lambda i: (0, 0)),      # ln gamma
                pl.BlockSpec((1, KP2), lambda i: (0, 0)),      # ln beta
                pl.BlockSpec(memory_space=pltpu.MemorySpace.SMEM),  # prelu alpha
            ],
            out_specs=pl.BlockSpec((bt, KP2), lambda i: (i, 0)),
        ),
        compiler_params=pltpu.CompilerParams(
            dimension_semantics=("parallel",)),
    )(x2d, w_fused, b_fused, gamma, beta, alpha)

    if Bp != B:
        out_flat = out_flat[:B]
    return out_flat.reshape(B, K, patch_size, patch_size)


def _reference(patch, params, patch_size):
    """Pure-JAX reference matching PyTorch semantics (unfused)."""
    B, C, E = patch.shape
    K = params["w_conv"].shape[0]
    proj = patch @ params["w_proj"].T + params["b_proj"]              # (B, C, P2)
    x = proj.reshape(B, C, patch_size, patch_size)
    w = params["w_conv"].reshape(K, C)
    conv = jnp.einsum("kc,bchw->bkhw", w, x) + params["b_conv"].reshape(1, K, 1, 1)
    mean = conv.reshape(B, -1).mean(axis=1).reshape(B, 1, 1, 1)
    var = conv.reshape(B, -1).var(axis=1).reshape(B, 1, 1, 1)
    normed = (conv - mean) / jnp.sqrt(var + LN_EPS)
    normed = normed * params["ln_gamma"][None] + params["ln_beta"][None]
    a = params["prelu"][0]
    return jnp.where(normed > 0, normed, a * normed)


if __name__ == "__main__":
    # args: embed_dim=32, image_size=16, patchs=4, scale_size=2, encoder_dim=8
    #   -> patchs > scale_size, so patch_size = image_size // patchs = 4
    embed_dim = 32
    image_size = 16
    patchs = 4
    scale_size = 2
    encoder_dim = 8
    patch_size = image_size // patchs if patchs > scale_size else image_size // scale_size
    P2 = patch_size * patch_size
    C = patchs ** 2
    B = 2

    key = jax.random.PRNGKey(0)
    k = jax.random.split(key, 8)

    params = {
        "w_proj": jax.random.normal(k[0], (P2, embed_dim), jnp.float32) * 0.05,
        "b_proj": jax.random.normal(k[1], (P2,), jnp.float32) * 0.05,
        "w_conv": jax.random.normal(k[2], (encoder_dim, C, 1, 1), jnp.float32) * 0.05,
        "b_conv": jax.random.normal(k[3], (encoder_dim,), jnp.float32) * 0.05,
        "ln_gamma": jnp.ones((encoder_dim, patch_size, patch_size), jnp.float32),
        "ln_beta": jnp.zeros((encoder_dim, patch_size, patch_size), jnp.float32),
        "prelu": jnp.full((1,), 0.25, jnp.float32),
    }

    patch = jax.random.normal(k[4], (B, C, embed_dim), jnp.float32)

    out = patch2feature(patch, params, patch_size)
    out = jax.block_until_ready(out)

    ref = _reference(patch, params, patch_size)
    assert out.shape == (B, encoder_dim, patch_size, patch_size)
    assert jnp.allclose(out, ref, atol=1e-4, rtol=1e-4), "mismatch vs reference"

    print("KERNEL_OK")
</pallas_src>

<mosaic_0001>
module attributes {stable_mosaic.version = 11 : i64} {
  func.func @_patch2feature_kernel(%arg0: i32, %arg1: memref<2x512xf32, #tpu.memory_space<vmem>>, %arg2: memref<512x128xf32, #tpu.memory_space<vmem>>, %arg3: memref<1x128xf32, #tpu.memory_space<vmem>>, %arg4: memref<1x128xf32, #tpu.memory_space<vmem>>, %arg5: memref<1x128xf32, #tpu.memory_space<vmem>>, %arg6: memref<1xf32, #tpu.memory_space<smem>>, %arg7: memref<2x128xf32, #tpu.memory_space<vmem>>) attributes {dimension_semantics = [#tpu.dimension_semantics<parallel>], iteration_bounds = array<i64: 1>, scalar_prefetch = 0 : i64, scratch_operands = 0 : i64, tpu.core_type = #tpu.core_type<tc>, window_params = [{transform_indices = @transform_0, window_bounds = array<i64: 2, 512>}, {pipeline_mode = #tpu.pipeline_mode<synchronous>, transform_indices = @transform_1, window_bounds = array<i64: 512, 128>}, {pipeline_mode = #tpu.pipeline_mode<synchronous>, transform_indices = @transform_2, window_bounds = array<i64: 1, 128>}, {pipeline_mode = #tpu.pipeline_mode<synchronous>, transform_indices = @transform_3, window_bounds = array<i64: 1, 128>}, {pipeline_mode = #tpu.pipeline_mode<synchronous>, transform_indices = @transform_4, window_bounds = array<i64: 1, 128>}, {transform_indices = @transform_5, window_bounds = array<i64: 1>}, {transform_indices = @transform_6, window_bounds = array<i64: 2, 128>}]} {
    %c0 = arith.constant 0 : index
    %c0_0 = arith.constant 0 : index
    %0 = vector.load %arg1[%c0, %c0_0] : memref<2x512xf32, #tpu.memory_space<vmem>>, vector<2x512xf32>
    %c0_1 = arith.constant 0 : index
    %c0_2 = arith.constant 0 : index
    %1 = vector.load %arg2[%c0_1, %c0_2] : memref<512x128xf32, #tpu.memory_space<vmem>>, vector<512x128xf32>
    %cst = arith.constant dense<0.000000e+00> : vector<2x128xf32>
    %2 = tpu.matmul %0, %1, %cst {dimension_numbers = #tpu.dot_dimension_numbers<[1], [0], [0], [1], [0, 0, 1, 1], [], []>} : vector<2x512xf32>, vector<512x128xf32>, vector<2x128xf32> -> vector<2x128xf32>
    %c0_3 = arith.constant 0 : index
    %c0_4 = arith.constant 0 : index
    %3 = vector.load %arg3[%c0_3, %c0_4] : memref<1x128xf32, #tpu.memory_space<vmem>>, vector<1x128xf32>
    %4 = vector.broadcast %3 : vector<1x128xf32> to vector<2x128xf32>
    %5 = arith.addf %2, %4 : vector<2x128xf32>
    %cst_5 = arith.constant dense<0.000000e+00> : vector<2xf32>
    %6 = vector.multi_reduction <add>, %5, %cst_5 [1] : vector<2x128xf32> to vector<2xf32>
    %7 = vector.shape_cast %6 : vector<2xf32> to vector<2x1xf32>
    %8 = arith.mulf %5, %5 : vector<2x128xf32>
    %cst_6 = arith.constant dense<0.000000e+00> : vector<2xf32>
    %9 = vector.multi_reduction <add>, %8, %cst_6 [1] : vector<2x128xf32> to vector<2xf32>
    %10 = vector.shape_cast %9 : vector<2xf32> to vector<2x1xf32>
    %cst_7 = arith.constant 7.812500e-03 : f32
    %11 = vector.broadcast %cst_7 : f32 to vector<2x1xf32>
    %12 = arith.mulf %7, %11 : vector<2x1xf32>
    %cst_8 = arith.constant 7.812500e-03 : f32
    %13 = vector.broadcast %cst_8 : f32 to vector<2x1xf32>
    %14 = arith.mulf %10, %13 : vector<2x1xf32>
    %15 = arith.mulf %12, %12 : vector<2x1xf32>
    %16 = arith.subf %14, %15 : vector<2x1xf32>
    %cst_9 = arith.constant 0.000000e+00 : f32
    %17 = vector.broadcast %cst_9 : f32 to vector<2x1xf32>
    %18 = arith.maximumf %16, %17 : vector<2x1xf32>
    %cst_10 = arith.constant 9.99999974E-6 : f32
    %19 = vector.broadcast %cst_10 : f32 to vector<2x1xf32>
    %20 = arith.addf %18, %19 : vector<2x1xf32>
    %21 = math.rsqrt %20 : vector<2x1xf32>
    %22 = vector.broadcast %12 : vector<2x1xf32> to vector<2x128xf32>
    %23 = arith.subf %5, %22 : vector<2x128xf32>
    %24 = vector.broadcast %21 : vector<2x1xf32> to vector<2x128xf32>
    %25 = arith.mulf %23, %24 : vector<2x128xf32>
    %c0_11 = arith.constant 0 : index
    %c0_12 = arith.constant 0 : index
    %26 = vector.load %arg4[%c0_11, %c0_12] : memref<1x128xf32, #tpu.memory_space<vmem>>, vector<1x128xf32>
    %27 = vector.broadcast %26 : vector<1x128xf32> to vector<2x128xf32>
    %28 = arith.mulf %25, %27 : vector<2x128xf32>
    %c0_13 = arith.constant 0 : index
    %c0_14 = arith.constant 0 : index
    %29 = vector.load %arg5[%c0_13, %c0_14] : memref<1x128xf32, #tpu.memory_space<vmem>>, vector<1x128xf32>
    %30 = vector.broadcast %29 : vector<1x128xf32> to vector<2x128xf32>
    %31 = arith.addf %28, %30 : vector<2x128xf32>
    %c0_15 = arith.constant 0 : index
    %32 = memref.load %arg6[%c0_15] : memref<1xf32, #tpu.memory_space<smem>>
    %cst_16 = arith.constant 0.000000e+00 : f32
    %33 = vector.broadcast %cst_16 : f32 to vector<2x128xf32>
    %34 = arith.cmpf ogt, %31, %33 : vector<2x128xf32>
    %35 = vector.broadcast %32 : f32 to vector<2x128xf32>
    %36 = arith.mulf %35, %31 : vector<2x128xf32>
    %37 = arith.select %34, %31, %36 : vector<2x128xi1>, vector<2x128xf32>
    %c0_17 = arith.constant 0 : index
    %c0_18 = arith.constant 0 : index
    %38 = vector.load %arg7[%c0_17, %c0_18] : memref<2x128xf32, #tpu.memory_space<vmem>>, vector<2x128xf32>
    tpu.vector_store %arg7[%c0_17, %c0_18], %37 {strides = array<i32>} : memref<2x128xf32, #tpu.memory_space<vmem>>, vector<2x128xf32>,
    return
  }
  func.func @transform_0(%arg0: i32) -> (i32, i32) {
    %c0_i32 = arith.constant 0 : i32
    %c0_i32_0 = arith.constant 0 : i32
    return %arg0, %c0_i32 : i32, i32
  }
  func.func @transform_1(%arg0: i32) -> (i32, i32) {
    %c0_i32 = arith.constant 0 : i32
    %c0_i32_0 = arith.constant 0 : i32
    %c0_i32_1 = arith.constant 0 : i32
    return %c0_i32, %c0_i32_0 : i32, i32
  }
  func.func @transform_2(%arg0: i32) -> (i32, i32) {
    %c0_i32 = arith.constant 0 : i32
    %c0_i32_0 = arith.constant 0 : i32
    %c0_i32_1 = arith.constant 0 : i32
    return %c0_i32, %c0_i32_0 : i32, i32
  }
  func.func @transform_3(%arg0: i32) -> (i32, i32) {
    %c0_i32 = arith.constant 0 : i32
    %c0_i32_0 = arith.constant 0 : i32
    %c0_i32_1 = arith.constant 0 : i32
    return %c0_i32, %c0_i32_0 : i32, i32
  }
  func.func @transform_4(%arg0: i32) -> (i32, i32) {
    %c0_i32 = arith.constant 0 : i32
    %c0_i32_0 = arith.constant 0 : i32
    %c0_i32_1 = arith.constant 0 : i32
    return %c0_i32, %c0_i32_0 : i32, i32
  }
  func.func @transform_5(%arg0: i32) -> i32 {
    %c0_i32 = arith.constant 0 : i32
    %c0_i32_0 = arith.constant 0 : i32
    return %c0_i32 : i32
  }
  func.func @transform_6(%arg0: i32) -> (i32, i32) {
    %c0_i32 = arith.constant 0 : i32
    %c0_i32_0 = arith.constant 0 : i32
    return %arg0, %c0_i32 : i32, i32
  }
}

</mosaic_0001>

<bundles_post_ra>
// kernel: tpu_custom_call.1
= control target key start
LH: loop header
LB: loop body
LE: loop exit
PB: predicated region body
PF: predicated region fallthrough
CT: control target
= control target key end

     0   :  { %12 = vsyncpa [#allocation4], 0  ;;  %s654_s0 = inlined_call_operand.hbm [shape: f32[2,512], index: 0, kind: input, shape index: {}]   ;;  %s655_s1 = inlined_call_operand.hbm [shape: f32[512,128], index: 1, kind: input, shape index: {}]   ;;  %s656_s2 = inlined_call_operand.vmem [shape: f32[1,128], index: 2, kind: input, shape index: {}]   ;;  %s657_s3 = inlined_call_operand.vmem [shape: f32[1,128], index: 3, kind: input, shape index: {}]   ;;  %s658_s4 = inlined_call_operand.vmem [shape: f32[1,128], index: 4, kind: input, shape index: {}]   ;;  %s659_s5 = inlined_call_operand.<no memory space> [shape: f32[1], index: 5, kind: input, shape index: {}]   ;;  %s660_s6 = inlined_call_operand.hbm [shape: f32[2,128], index: 6, kind: output, shape index: {}]  }
   0x1   :  { %13 = vsyncpa [#allocation7], 0 }
   0x2   :  { %14 = vsyncpa [#allocation5], 0  ;;  %s558_s21 = smov [#allocation3]   ;;  %s559_s23 = smov [#allocation6]  }
   0x3   :  { %s21_s22 = sshll.u32 %s558_s21, 4  ;;  %s30_s24 = sshll.u32 %s559_s23, 4  ;;  %s22_s22 = int_to_ptr.vmem [resolvable:$true] %s21_s22  ;;  %s599_s24 = int_to_ptr.vmem [resolvable:$true] %s30_s24 }
   0x4   :  { %s486_s27 = scalar_lea.hbm %s654_s0, 128 }
   0x5   :  { %p487_p0 = scmp.ne.s32.totalorder %s654_s0, %s486_s27  ;;  %p490_p1 = scmp.lt.u32.totalorder %s486_s27, %s654_s0 }
   0x7   :  { %p492_p2 = pnand %p490_p1, %p487_p0 }
   0x9   :  { %495 = shalt.err (!%p492_p2)
}
   0xa   :  { %s496_s8 = scalar_lea.vmem %s22_s22, 128  ;;  %p501_p4 = scmp.lt.s32.totalorder %s22_s22, %s22_s22 }
   0xb   :  { %p497_p3 = scmp.ne.s32.totalorder %s22_s22, %s496_s8  ;;  %p502_p5 = scmp.lt.s32.totalorder %s496_s8, %s496_s8 }
   0xd   :  { %p503_p6 = por %p502_p5, %p501_p4 }
   0xf   :  { %p504_p7 = pnand %p503_p6, %p497_p3 }
  0x11   :  { %507 = shalt.err (!%p504_p7)
}
  0x12   :  { %24 = dma.hbm_to_vmem [thread:$0]  %s654_s0, 128, %s22_s22, [#allocation4]  }
  0x13   :  { %s508_s13 = scalar_lea.hbm %s655_s1, 8192 }
  0x14   :  { %p509_p8 = scmp.ne.s32.totalorder %s655_s1, %s508_s13  ;;  %p512_p9 = scmp.lt.u32.totalorder %s508_s13, %s655_s1 }
  0x16   :  { %p514_p10 = pnand %p512_p9, %p509_p8 }
  0x18   :  { %517 = shalt.err (!%p514_p10)
}
  0x19   :  { %s518_s18 = scalar_lea.vmem %s599_s24, 8192  ;;  %p523_p12 = scmp.lt.s32.totalorder %s599_s24, %s599_s24 }
  0x1a   :  { %p519_p11 = scmp.ne.s32.totalorder %s599_s24, %s518_s18  ;;  %p524_p13 = scmp.lt.s32.totalorder %s518_s18, %s518_s18 }
  0x1c   :  { %p525_p0 = por %p524_p13, %p523_p12 }
  0x1e   :  { %p526_p1 = pnand %p525_p0, %p519_p11 }
  0x20   :  { %529 = shalt.err (!%p526_p1)
}
  0x21   :  { %s560_s0 = smov 128   ;;  %s561_s19 = smov 8  }
  0x22   :  { %36 = dma.hbm_to_vmem [thread:$0]  %s655_s1, 8192, %s599_s24, [#allocation7], %s560_s0, %s560_s0, %s561_s19  }
  0x23   :  { %552 = dma.done.wait [#allocation4], 128  }
  0x24   :  { %553 = vsyncadd [#allocation4], 4294967168 }
  0x25   :  { %554 = dma.done.wait [#allocation7], 8192  }
  0x26   :  { %555 = vsyncadd [#allocation7], 4294959104  ;;  %v68_v0 = vld [vmem:[#allocation6 + $0x80] sm:$0xff]  ;;  %v69_v1 = vld [vmem:[#allocation6 + $0x88] sm:$0xff]  ;;  %v562_v47 = vmov 1983009808   ;;  %v128_v49 = vlaneseq }
  0x27   :  { %v52_v2 = vld [vmem:[#allocation6] sm:$0xff]  ;;  %v413_v3 = vpack.c.bf16 %v69_v1, %v68_v0  ;;  %v53_v4 = vld [vmem:[#allocation6 + $0x8] sm:$0xff]  ;;  %v70_v11 = vld [vmem:[#allocation6 + $0x90] sm:$0xff]  ;;  %v126_v48 = vunpack.c.l.s4 %v562_v47  ;;  %vm285_vm0 = vcmask 1041408   ;;  %s563_s28 = smov [#allocation8]  }
  0x28   :  { %v100_v5 = vld [vmem:[#allocation6 + $0x180] sm:$0xff]  ;;  %v101_v6 = vld [vmem:[#allocation6 + $0x188] sm:$0xff]  ;;  %v415_v7 = vpack.c.bf16 %v53_v4, %v52_v2  ;;  %v71_v13 = vld [vmem:[#allocation6 + $0x98] sm:$0xff]  ;;  %v129_v0 = vshrl.u32 %v128_v49, 7  ;;  %s330_s29 = sshll.u32 %s563_s28, 4  ;;  %s331_s29 = int_to_ptr.vmem [resolvable:$true] %s330_s29 }
  0x29   :  { %v445_v8 = vpack.c.bf16 %v101_v6, %v100_v5  ;;  %v84_v9 = vld [vmem:[#allocation6 + $0x100] sm:$0xff]  ;;  %v85_v10 = vld [vmem:[#allocation6 + $0x108] sm:$0xff]  ;;  %414 = vmatprep.subr.bf16.mxu0 %v413_v3  ;;  %v54_v14 = vld [vmem:[#allocation6 + $0x10] sm:$0xff]  ;;  %v417_v16 = vpack.c.bf16 %v71_v13, %v70_v11  ;;  %v127_v63 = vunpack.c.0.s8 %v126_v48  ;;  %s530_s30 = scalar_lea.vmem %s331_s29, 32  ;;  %p535_p3 = scmp.lt.s32.totalorder %s331_s29, %s331_s29 }
  0x2a   :  { %v447_v12 = vpack.c.bf16 %v85_v10, %v84_v9  ;;  %v55_v15 = vld [vmem:[#allocation6 + $0x18] sm:$0xff]  ;;  %416 = vmatpush3.bf16.msra.mxu0 %v415_v7  ;;  %v102_v18 = vld [vmem:[#allocation6 + $0x190] sm:$0xff]  ;;  %v72_v23 = vld [vmem:[#allocation6 + $0xa0] sm:$0xff]  ;;  %p531_p2 = scmp.ne.s32.totalorder %s331_s29, %s530_s30  ;;  %p536_p4 = scmp.lt.s32.totalorder %s530_s30, %s530_s30 }
  0x2b   :  { %446 = vmatprep.subr.bf16.mxu1 %v445_v8  ;;  %v419_v17 = vpack.c.bf16 %v55_v15, %v54_v14  ;;  %v103_v19 = vld [vmem:[#allocation6 + $0x198] sm:$0xff]  ;;  %v86_v20 = vld [vmem:[#allocation6 + $0x110] sm:$0xff]  ;;  %v73_v24 = vld [vmem:[#allocation6 + $0xa8] sm:$0xff]  ;;  %418 = vmatprep.subr.bf16.mxu0 %v417_v16  ;;  %v130_v13 = vsub.s32 %v127_v63, %v129_v0 }
  0x2c   :  { %448 = vmatpush3.bf16.msra.mxu1 %v447_v12  ;;  %v449_v21 = vpack.c.bf16 %v103_v19, %v102_v18  ;;  %v87_v22 = vld [vmem:[#allocation6 + $0x118] sm:$0xff]  ;;  %v421_v26 = vpack.c.bf16 %v73_v24, %v72_v23  ;;  %v56_v27 = vld [vmem:[#allocation6 + $0x20] sm:$0xff]  ;;  %v57_v28 = vld [vmem:[#allocation6 + $0x28] sm:$0xff]  ;;  %p537_p5 = por %p536_p4, %p535_p3 }
  0x2d   :  { %v451_v25 = vpack.c.bf16 %v87_v22, %v86_v20  ;;  %v104_v29 = vld [vmem:[#allocation6 + $0x1a0] sm:$0xff]  ;;  %v105_v30 = vld [vmem:[#allocation6 + $0x1a8] sm:$0xff]  ;;  %v423_v33 = vpack.c.bf16 %v57_v28, %v56_v27  ;;  %v74_v35 = vld [vmem:[#allocation6 + $0xb0] sm:$0xff] }
  0x2e   :  { %450 = vmatprep.subr.bf16.mxu1 %v449_v21  ;;  %v88_v31 = vld [vmem:[#allocation6 + $0x120] sm:$0xff]  ;;  %v89_v32 = vld [vmem:[#allocation6 + $0x128] sm:$0xff]  ;;  %420 = vmatpush3.bf16.msra.mxu0 %v419_v17  ;;  %v453_v34 = vpack.c.bf16 %v105_v30, %v104_v29  ;;  %v75_v36 = vld [vmem:[#allocation6 + $0xb8] sm:$0xff]  ;;  %p538_p6 = pnand %p537_p5, %p531_p2 }
  0x2f   :  { %v58_v37 = vld [vmem:[#allocation6 + $0x30] sm:$0xff]  ;;  %422 = vmatprep.subr.bf16.mxu0 %v421_v26  ;;  %v455_v38 = vpack.c.bf16 %v89_v32, %v88_v31  ;;  %v425_v39 = vpack.c.bf16 %v75_v36, %v74_v35  ;;  %v59_v40 = vld [vmem:[#allocation6 + $0x38] sm:$0xff]  ;;  %v76_v46 = vld [vmem:[#allocation6 + $0xc0] sm:$0xff] }
  0x30   :  { %452 = vmatpush3.bf16.msra.mxu1 %v451_v25  ;;  %v106_v41 = vld [vmem:[#allocation6 + $0x1b0] sm:$0xff]  ;;  %v107_v42 = vld [vmem:[#allocation6 + $0x1b8] sm:$0xff]  ;;  %v77_v50 = vld [vmem:[#allocation6 + $0xc8] sm:$0xff]  ;;  %v427_v51 = vpack.c.bf16 %v59_v40, %v58_v37 }
  0x31   :  { %454 = vmatprep.subr.bf16.mxu1 %v453_v34  ;;  %v457_v43 = vpack.c.bf16 %v107_v42, %v106_v41  ;;  %v90_v44 = vld [vmem:[#allocation6 + $0x130] sm:$0xff]  ;;  %v91_v45 = vld [vmem:[#allocation6 + $0x138] sm:$0xff]  ;;  %v108_v52 = vld [vmem:[#allocation6 + $0x1c0] sm:$0xff]  ;;  %v429_v55 = vpack.c.bf16 %v77_v50, %v76_v46 }
  0x32   :  { %424 = vmatpush3.bf16.msra.mxu0 %v423_v33  ;;  %v109_v53 = vld [vmem:[#allocation6 + $0x1c8] sm:$0xff]  ;;  %v459_v54 = vpack.c.bf16 %v91_v45, %v90_v44  ;;  %v60_v56 = vld [vmem:[#allocation6 + $0x40] sm:$0xff]  ;;  %v78_v61 = vld [vmem:[#allocation6 + $0xd0] sm:$0xff] }
  0x33   :  { %426 = vmatprep.subr.bf16.mxu0 %v425_v39  ;;  %v61_v57 = vld [vmem:[#allocation6 + $0x48] sm:$0xff]  ;;  %v92_v58 = vld [vmem:[#allocation6 + $0x140] sm:$0xff]  ;;  %v461_v59 = vpack.c.bf16 %v109_v53, %v108_v52  ;;  %v79_v62 = vld [vmem:[#allocation6 + $0xd8] sm:$0xff] }
  0x34   :  { %456 = vmatpush3.bf16.msra.mxu1 %v455_v38  ;;  %v93_v60 = vld [vmem:[#allocation6 + $0x148] sm:$0xff]  ;;  %v110_v1 = vld [vmem:[#allocation6 + $0x1d0] sm:$0xff]  ;;  %v111_v2 = vld [vmem:[#allocation6 + $0x1d8] sm:$0xff]  ;;  %v431_v3 = vpack.c.bf16 %v61_v57, %v60_v56  ;;  %v433_v5 = vpack.c.bf16 %v79_v62, %v78_v61 }
  0x35   :  { %458 = vmatprep.subr.bf16.mxu1 %v457_v43  ;;  %v463_v4 = vpack.c.bf16 %v93_v60, %v92_v58  ;;  %v62_v6 = vld [vmem:[#allocation6 + $0x50] sm:$0xff]  ;;  %v63_v7 = vld [vmem:[#allocation6 + $0x58] sm:$0xff]  ;;  %v465_v9 = vpack.c.bf16 %v111_v2, %v110_v1  ;;  %v80_v11 = vld [vmem:[#allocation6 + $0xe0] sm:$0xff] }
  0x36   :  { %428 = vmatpush3.bf16.msra.mxu0 %v427_v51  ;;  %v94_v8 = vld [vmem:[#allocation6 + $0x150] sm:$0xff]  ;;  %v95_v10 = vld [vmem:[#allocation6 + $0x158] sm:$0xff]  ;;  %v81_v12 = vld [vmem:[#allocation6 + $0xe8] sm:$0xff]  ;;  %v435_v16 = vpack.c.bf16 %v63_v7, %v62_v6  ;;  %v320_v6 = vstv %s659_s5 }
  0x37   :  { %430 = vmatprep.subr.bf16.mxu0 %v429_v55  ;;  %v112_v14 = vld [vmem:[#allocation6 + $0x1e0] sm:$0xff]  ;;  %v113_v15 = vld [vmem:[#allocation6 + $0x1e8] sm:$0xff]  ;;  %v467_v18 = vpack.c.bf16 %v95_v10, %v94_v8  ;;  %v437_v19 = vpack.c.bf16 %v81_v12, %v80_v11  ;;  %v51_v22 = vld [vmem:[#allocation3] sm:$0xff] }
  0x38   :  { %460 = vmatpush3.bf16.msra.mxu1 %v459_v54  ;;  %v64_v17 = vld [vmem:[#allocation6 + $0x60] sm:$0xff]  ;;  %v65_v20 = vld [vmem:[#allocation6 + $0x68] sm:$0xff]  ;;  %v469_v23 = vpack.c.bf16 %v113_v15, %v112_v14  ;;  %v82_v25 = vld [vmem:[#allocation6 + $0xf0] sm:$0xff]  ;;  %v131_v27 = vrot.slane %v51_v22, %v130_v13  ;;  %v124_v28 = vcombine.high %v51_v22, %v51_v22 }
  0x39   :  { %462 = vmatprep.subr.bf16.mxu1 %v461_v59  ;;  %v96_v21 = vld [vmem:[#allocation6 + $0x160] sm:$0xff]  ;;  %v97_v24 = vld [vmem:[#allocation6 + $0x168] sm:$0xff]  ;;  %v83_v26 = vld [vmem:[#allocation6 + $0xf8] sm:$0xff]  ;;  %v439_v31 = vpack.c.bf16 %v65_v20, %v64_v17 }
  0x3a   :  { %432 = vmatpush3.bf16.msra.mxu0 %v431_v3  ;;  %v114_v29 = vld [vmem:[#allocation6 + $0x1f0] sm:$0xff]  ;;  %v115_v30 = vld [vmem:[#allocation6 + $0x1f8] sm:$0xff]  ;;  %v139_v32 = vcombine.high %v131_v27, %v131_v27  ;;  %v138_v33 = vrot.slane %v124_v28, %v130_v13  ;;  %v471_v34 = vpack.c.bf16 %v97_v24, %v96_v21  ;;  %v441_v35 = vpack.c.bf16 %v83_v26, %v82_v25 }
  0x3b   :  { %434 = vmatprep.subr.bf16.mxu0 %v433_v5  ;;  %v66_v36 = vld [vmem:[#allocation6 + $0x70] sm:$0xff]  ;;  %v67_v37 = vld [vmem:[#allocation6 + $0x78] sm:$0xff]  ;;  %v473_v38 = vpack.c.bf16 %v115_v30, %v114_v29 }
  0x3c   :  { %464 = vmatpush3.bf16.msra.mxu1 %v463_v4  ;;  %v98_v39 = vld [vmem:[#allocation6 + $0x170] sm:$0xff]  ;;  %v99_v40 = vld [vmem:[#allocation6 + $0x178] sm:$0xff]  ;;  %209 = vmatprep.mubr.f32.mxu0 %v139_v32  ;;  %v140_v41 = vcombine.high %v138_v33, %v138_v33  ;;  %v443_v42 = vpack.c.bf16 %v67_v37, %v66_v36 }
  0x3d   :  { %466 = vmatprep.subr.bf16.mxu1 %v465_v9  ;;  %v475_v43 = vpack.c.bf16 %v99_v40, %v98_v39  ;;  %v340_v45 = vld [vmem:[%s656_s2] ss:$0 sm:$0xff] }
  0x3e   :  { %436 = vmatpush3.bf16.msra.mxu0 %v435_v16  ;;  %279 = vmatprep.mubr.f32.mxu1 %v140_v41  ;;  %v341_v2 = vld [vmem:[%s657_s3] ss:$0 sm:$0xff] }
  0x3f   :  { %438 = vmatprep.subr.bf16.mxu0 %v437_v19  ;;  %v342_v4 = vld [vmem:[%s658_s4] ss:$0 sm:$0xff] }
  0x40   :  { %468 = vmatpush3.bf16.msra.mxu1 %v467_v18 }
  0x41   :  { %470 = vmatprep.subr.bf16.mxu1 %v469_v23 }
  0x42   :  { %440 = vmatpush3.bf16.msra.mxu0 %v439_v31 }
  0x43   :  { %442 = vmatprep.subr.bf16.mxu0 %v441_v35 }
  0x44   :  { %472 = vmatpush3.bf16.msra.mxu1 %v471_v34 }
  0x45   :  { %474 = vmatprep.subr.bf16.mxu1 %v473_v38 }
  0x46   :  { %444 = vmatpush3.bf16.msra.mxu0 %v443_v42 }
  0x48   :  { %476 = vmatpush3.bf16.msra.mxu1 %v475_v43 }
  0x49   :  { %210 = vmatmul.mubr.f32.vlgmr.msra.gmra.mrb[0].mxu0 %v131_v27 }
  0x4b   :  { %280 = vmatmul.mubr.f32.vlgmr.msra.gmra.mrb[0].mxu1 %v138_v33 }
 0x11c   :  { %v375_v44 = vpop.f32.mrb[0].mxu0 }
 0x11d   :  { %v376_v46 = vpop.f32.mrb[1].mxu0 }
 0x11e   :  { %v410_v47 = vpop.f32.mrb[0].mxu1  ;;  %v377_v48 = vadd.f32 %v376_v46, %v375_v44 }
 0x11f   :  { %v411_v49 = vpop.f32.mrb[1].mxu1 }
 0x120   :  { %v412_v50 = vadd.f32 %v411_v49, %v410_v47  ;;  %v212_v51 = vadd.f32 %v377_v48, %v340_v45 }
 0x122   :  { %v282_v52 = vadd.f32 %v412_v50, %v212_v51 }
 0x124   :  { %v286_v53 = vsel %vm285_vm0, %v282_v52, 0.0  ;;  %v289_v54 = vmul.f32 %v282_v52, %v282_v52 }
 0x125   :  { %287 = vadd.xlane.f32.xlu0 %v286_v53 }
 0x126   :  { %v290_v55 = vsel %vm285_vm0, %v289_v54, 0.0 }
 0x129   :  { %291 = vadd.xlane.f32.xlu0 %v290_v55 }
 0x1b2   :  { %v288_v56 = vpop.xlane.xlu0 %287 }
 0x1b3   :  { %v293_v57 = vmul.f32 0.0078125, %v288_v56 }
 0x1b5   :  { %v295_v59 = vmul.f32 %v293_v57, %v293_v57  ;;  %v300_v0 = vsub.f32 %v282_v52, %v293_v57 }
 0x1b6   :  { %v292_v58 = vpop.xlane.xlu0 %291 }
 0x1b7   :  { %v294_v60 = vmul.f32 0.0078125, %v292_v58 }
 0x1b9   :  { %v296_v61 = vsub.f32 %v294_v60, %v295_v59 }
 0x1bb   :  { %v297_v62 = vmax.f32 %v296_v61, 0.0 }
 0x1bd   :  { %v298_v63 = vadd.f32 1e-05, %v297_v62 }
 0x1bf   :  { %484 = vrsqrt.f32 %v298_v63 }
 0x1c9   :  { %v485_v1 = vpop.eup %484 }
 0x1ca   :  { %v301_v3 = vmul.f32 %v485_v1, %v300_v0 }
 0x1cc   :  { %v309_v5 = vmul.f32 %v341_v2, %v301_v3 }
 0x1ce   :  { %v317_v7 = vadd.f32 %v342_v4, %v309_v5 }
 0x1d0   :  { %vm319_vm1 = vcmp.gt.f32.partialorder %v317_v7, 0.0  ;;  %v321_v8 = vmul.f32 %v320_v6, %v317_v7 }
 0x1d2   :  { %v322_v9 = vsel %vm319_vm1, %v317_v7, %v321_v8 }
 0x1d3   :  { %323 = vst [vmem:[#allocation8] sm:$0x3] %v322_v9 }
 0x1d4   :  { %541 = shalt.err (!%p538_p6)
}
 0x1d5   :  { %s542_s7 = scalar_lea.hbm %s660_s6, 32 }
 0x1d6   :  { %p543_p7 = scmp.ne.s32.totalorder %s660_s6, %s542_s7  ;;  %p546_p8 = scmp.lt.u32.totalorder %s542_s7, %s660_s6 }
 0x1d8   :  { %p548_p9 = pnand %p546_p8, %p543_p7 }
 0x1da   :  { %551 = shalt.err (!%p548_p9)
}
 0x1db   :  { %333 = dma.vmem_to_hbm [thread:$0]  %s331_s29, 32, %s660_s6, [#allocation5]  }
 0x1dc   :  { %556 = dma.done.wait [#allocation5], 32  }
 0x1dd   :  { %557 = vsyncadd [#allocation5], 4294967264 }
 0x1de   :  { %337 = vsyncpa [#allocation4], 1 }
 0x1df   :  { %338 = vsyncpa [#allocation7], 1 }
 0x1e0   :  { %339 = vsyncpa [#allocation5], 1 }

</bundles_post_ra>
